<compile_context>
chip_gen: v7x
topology: tpu7x:2x2x1
jax: 0.10.0
libtpu: 0.0.40
codegen_flags: <defaults>
</compile_context>

<pallas_src>
import functools

import jax
import jax.numpy as jnp
from jax.experimental import pallas as pl
from jax.experimental.pallas import tpu as pltpu

LANE = 128


def _round_up(x, m):
    return (x + m - 1) // m * m


def _pick_vmem_limit():
    """Generation-aware scoped-VMEM limit (leave ~25% headroom)."""
    try:
        cap = int(pltpu.get_tpu_info().vmem_capacity_bytes)
    except Exception:  # pragma: no cover - conservative fallback
        cap = 64 * 1024 * 1024
    return int(max(32 * 1024 * 1024, min(cap * 3 // 4, 96 * 1024 * 1024)))


def _choose_tiles(n):
    """Pick (tile_m, tile_k, n_pad) with tile_m | n_pad and tile_k | n_pad."""
    n0 = _round_up(n, LANE)
    if n0 <= 2048:
        # Small graph: single k tile; row tile <= 512 that divides n0.
        tile_m = LANE
        for cand in (512, 384, 256):
            if n0 % cand == 0:
                tile_m = cand
                break
        return tile_m, n0, n0
    # Large graph: biggest k tile whose grid-padding waste stays <= ~12.5%.
    tile_k = 256
    for cand in (2048, 1024, 512):
        if _round_up(n0, cand) - n0 <= n0 // 8:
            tile_k = cand
            break
    tile_m = min(512, tile_k)          # tile_m divides tile_k (powers of two)
    n_p = _round_up(n0, tile_k)
    return tile_m, tile_k, n_p


def _resident_x_fits(n_p, cin, cout, tile_m, tile_k, vmem_limit):
    """Estimate fused-kernel VMEM footprint with a fully resident X."""
    a_buf = 2 * tile_m * tile_k * 2          # bf16, double-buffered
    x_buf = 2 * n_p * cin * 2                # resident X (still 2 buffers)
    w_buf = 2 * cin * cout * 2
    o_buf = 2 * tile_m * cout * 4
    acc = tile_m * cout * 4
    slack = 4 * 1024 * 1024                  # compiler temporaries (xw tile etc.)
    return (a_buf + x_buf + w_buf + o_buf + acc + slack) < int(0.8 * vmem_limit)


# ---------------------------------------------------------------------------
# Fused GCN layer kernel:  Y = act( A_hat @ (X @ W) + b )
#   grid = (row_tiles, k_tiles); f32 VMEM accumulator; W (and, if it fits, the
#   whole X) resident in VMEM so no XW intermediate ever touches HBM.
# ---------------------------------------------------------------------------
def _gcn_layer_kernel(a_ref, x_ref, w_ref, b_ref, o_ref, acc_ref, *,
                      tile_k, activation, x_resident):
    k = pl.program_id(1)

    @pl.when(k == 0)
    def _():
        acc_ref[...] = jnp.zeros_like(acc_ref)

    if x_resident:
        k0 = pl.multiple_of(k * tile_k, tile_k)
        x_blk = x_ref[pl.ds(k0, tile_k), :]          # slice resident X
    else:
        x_blk = x_ref[...]                           # streamed (tile_k, cin) block

    xw = jnp.dot(x_blk, w_ref[...], preferred_element_type=jnp.float32)
    acc_ref[...] += jnp.dot(a_ref[...], xw.astype(jnp.bfloat16),
                            preferred_element_type=jnp.float32)

    @pl.when(k == pl.num_programs(1) - 1)
    def _():
        y = acc_ref[...] + b_ref[...]
        if activation == "relu":
            y = jnp.maximum(y, 0.0)
        elif activation == "sigmoid":
            y = jax.nn.sigmoid(y)
        o_ref[...] = y.astype(o_ref.dtype)


def gcn_layer(a_pad, x_pad, w_pad, b_pad, *, tile_m, tile_k, activation,
              out_dtype, x_resident, vmem_limit):
    n_p = a_pad.shape[0]
    cin = x_pad.shape[1]
    cout = w_pad.shape[1]
    row_tiles = n_p // tile_m
    k_tiles = n_p // tile_k

    if x_resident:
        x_spec = pl.BlockSpec((n_p, cin), lambda i, k: (0, 0))
        x_bytes = n_p * cin * x_pad.dtype.itemsize
    else:
        x_spec = pl.BlockSpec((tile_k, cin), lambda i, k: (k, 0))
        x_bytes = row_tiles * n_p * cin * x_pad.dtype.itemsize

    flops = 2 * n_p * n_p * cout + 2 * row_tiles * n_p * cin * cout
    transcendentals = n_p * cout if activation == "sigmoid" else 0
    bytes_accessed = (a_pad.size * a_pad.dtype.itemsize
                      + x_bytes
                      + w_pad.size * w_pad.dtype.itemsize
                      + b_pad.size * b_pad.dtype.itemsize
                      + n_p * cout * jnp.dtype(out_dtype).itemsize)

    kernel = functools.partial(_gcn_layer_kernel, tile_k=tile_k,
                               activation=activation, x_resident=x_resident)
    # NOTE: if profiling shows exposed DMA on the A_hat stream, add
    # pipeline_mode=pl.Buffered(3) to its BlockSpec (VMEM headroom is ample).
    return pl.pallas_call(
        kernel,
        out_shape=jax.ShapeDtypeStruct((n_p, cout), out_dtype),
        grid_spec=pltpu.PrefetchScalarGridSpec(
            num_scalar_prefetch=0,
            grid=(row_tiles, k_tiles),
            in_specs=[
                pl.BlockSpec((tile_m, tile_k), lambda i, k: (i, k)),
                x_spec,
                pl.BlockSpec((cin, cout), lambda i, k: (0, 0)),
                pl.BlockSpec((1, cout), lambda i, k: (0, 0)),
            ],
            out_specs=pl.BlockSpec((tile_m, cout), lambda i, k: (i, 0)),
            scratch_shapes=[pltpu.VMEM((tile_m, cout), jnp.float32)],
        ),
        compiler_params=pltpu.CompilerParams(
            dimension_semantics=("parallel", "arbitrary"),
            vmem_limit_bytes=vmem_limit,
        ),
        cost_estimate=pl.CostEstimate(
            flops=flops, transcendentals=transcendentals,
            bytes_accessed=bytes_accessed),
    )(a_pad, x_pad, w_pad, b_pad)


# ---------------------------------------------------------------------------
# Glue (plain JAX): normalized adjacency, PyG gcn_norm semantics.
# ---------------------------------------------------------------------------
def build_normalized_adjacency_padded(edge_index, num_nodes, n_pad,
                                      dtype=jnp.bfloat16):
    """Builds D^-1/2 (A+I) D^-1/2 directly into the padded bf16 buffer.

    Degrees come from an edge scatter (no N^2 row-sum); the D^-1/2 scaling is
    folded into the per-edge values so a single scatter-add produces the final
    normalized, padded, bf16 adjacency (padded rows/cols stay exactly zero).
    """
    src = edge_index[0]
    dst = edge_index[1]
    n = num_nodes
    off = (src != dst).astype(jnp.float32)          # drop existing self loops
    deg = jnp.ones((n,), jnp.float32).at[dst].add(off)   # +1 self loop per node
    dinv = jax.lax.rsqrt(deg)                        # deg >= 1 always
    vals = (off * dinv[dst] * dinv[src]).astype(dtype)
    diag = jnp.arange(n)
    a = jnp.zeros((n_pad, n_pad), dtype)
    a = a.at[dst, src].add(vals)                     # duplicates accumulate
    a = a.at[diag, diag].add((dinv * dinv).astype(dtype))
    return a


def build_normalized_adjacency(edge_index, num_nodes):
    """f32 reference construction (structurally independent of the kernel path)."""
    src = edge_index[0]
    dst = edge_index[1]
    n = num_nodes
    off = (src != dst).astype(jnp.float32)
    a = jnp.zeros((n, n), jnp.float32).at[dst, src].add(off)
    a = a + jnp.eye(n, dtype=jnp.float32)
    deg = jnp.sum(a, axis=1)
    dinv = jnp.where(deg > 0.0, jax.lax.rsqrt(deg), 0.0)
    return dinv[:, None] * a * dinv[None, :]


def gcn_forward(x, edge_index, params, *, tile_m=None, tile_k=None,
                x_resident=None):
    w1, b1, w2, b2 = params
    n, cin = x.shape
    hid = w1.shape[1]
    cls = w2.shape[1]

    if tile_m is None or tile_k is None:
        tile_m, tile_k, n_p = _choose_tiles(n)
    else:
        # Caller-supplied tiles must satisfy tile_m | tile_k or tile_k | tile_m.
        n_p = _round_up(n, max(tile_m, tile_k))

    cin_p = _round_up(cin, LANE)
    hid_p = _round_up(hid, LANE)
    cls_p = _round_up(cls, LANE)

    vmem_limit = _pick_vmem_limit()
    if x_resident is None:
        x_resident = _resident_x_fits(n_p, max(cin_p, hid_p),
                                      max(hid_p, cls_p), tile_m, tile_k,
                                      vmem_limit)

    a_pad = build_normalized_adjacency_padded(edge_index, n, n_p)
    x_pad = jnp.zeros((n_p, cin_p), jnp.bfloat16).at[:n, :cin].set(
        x.astype(jnp.bfloat16))
    w1_p = jnp.zeros((cin_p, hid_p), jnp.bfloat16).at[:cin, :hid].set(
        w1.astype(jnp.bfloat16))
    b1_p = jnp.zeros((1, hid_p), jnp.float32).at[0, :hid].set(b1)
    w2_p = jnp.zeros((hid_p, cls_p), jnp.bfloat16).at[:hid, :cls].set(
        w2.astype(jnp.bfloat16))
    b2_p = jnp.zeros((1, cls_p), jnp.float32).at[0, :cls].set(b2)

    # Layer 1: relu( A_hat @ (X @ W1) + b1 )      (fused, single pallas_call)
    h = gcn_layer(a_pad, x_pad, w1_p, b1_p, tile_m=tile_m, tile_k=tile_k,
                  activation="relu", out_dtype=jnp.bfloat16,
                  x_resident=x_resident, vmem_limit=vmem_limit)
    # F.dropout(..., training=self.training): identity in eval mode.

    # Layer 2: sigmoid( A_hat @ (H @ W2) + b2 )
    z = gcn_layer(a_pad, h, w2_p, b2_p, tile_m=tile_m, tile_k=tile_k,
                  activation="sigmoid", out_dtype=jnp.float32,
                  x_resident=x_resident, vmem_limit=vmem_limit)
    return z[:n, :cls]


def init_params(key, in_channels, hidden_channels, class_channels):
    """Deterministic glorot-ish init matching GCNConv parameter shapes."""
    k1, k2, k3, k4 = jax.random.split(key, 4)
    s1 = (6.0 / (in_channels + hidden_channels)) ** 0.5
    s2 = (6.0 / (hidden_channels + class_channels)) ** 0.5
    w1 = jax.random.uniform(k1, (in_channels, hidden_channels), jnp.float32, -s1, s1)
    b1 = 0.01 * jax.random.normal(k2, (hidden_channels,), jnp.float32)
    w2 = jax.random.uniform(k3, (hidden_channels, class_channels), jnp.float32, -s2, s2)
    b2 = 0.01 * jax.random.normal(k4, (class_channels,), jnp.float32)
    return w1, b1, w2, b2


def gcn_reference(x, edge_index, params):
    """Pure-JAX f32 reference for correctness checking."""
    w1, b1, w2, b2 = params
    a_hat = build_normalized_adjacency(edge_index, x.shape[0])
    h = jnp.maximum(a_hat @ (x @ w1) + b1, 0.0)
    z = a_hat @ (h @ w2) + b2
    return jax.nn.sigmoid(z)


if __name__ == "__main__":
    key = jax.random.PRNGKey(0)

    def run_case(num_nodes, in_ch, hid_ch, cls_ch, num_edges, **kw):
        kx, ke, kp = jax.random.split(jax.random.fold_in(key, num_nodes), 3)
        x = jax.random.normal(kx, (num_nodes, in_ch), jnp.float32)
        edge_index = jax.random.randint(ke, (2, num_edges), 0, num_nodes, jnp.int32)
        params = init_params(kp, in_ch, hid_ch, cls_ch)
        fwd = jax.jit(functools.partial(gcn_forward, **kw))
        out = jax.block_until_ready(fwd(x, edge_index, params))
        assert out.shape == (num_nodes, cls_ch)
        assert bool(jnp.all((out > 0.0) & (out < 1.0)))
        ref = gcn_reference(x, edge_index, params)
        err = float(jnp.max(jnp.abs(out - ref)))
        assert err < 4e-2, err
        return err

    # 1) Tiny demo shape (auto tiles, resident X, 1x1 grid).
    run_case(16, 8, 32, 4, 40)
    # 2) Multi-tile grid (4 row tiles x 2 k tiles) with resident X (slice path).
    run_case(300, 8, 32, 4, 900, tile_m=128, tile_k=256, x_resident=True)
    # 3) Same grid, streamed-X fallback path.
    run_case(300, 8, 32, 4, 900, tile_m=128, tile_k=256, x_resident=False)

    print("KERNEL_OK")
</pallas_src>

<mosaic_0001>
module attributes {stable_mosaic.version = 11 : i64} {
  func.func @_gcn_layer_kernel(%arg0: i32, %arg1: i32, %arg2: memref<128x128xbf16, #tpu.memory_space<vmem>>, %arg3: memref<128x128xbf16, #tpu.memory_space<vmem>>, %arg4: memref<128x128xbf16, #tpu.memory_space<vmem>>, %arg5: memref<1x128xf32, #tpu.memory_space<vmem>>, %arg6: memref<128x128xbf16, #tpu.memory_space<vmem>>, %arg7: memref<128x128xf32, #tpu.memory_space<vmem>>) attributes {dimension_semantics = [#tpu.dimension_semantics<parallel>, #tpu.dimension_semantics<arbitrary>], iteration_bounds = array<i64: 1, 1>, scalar_prefetch = 0 : i64, scratch_operands = 1 : i64, tpu.core_type = #tpu.core_type<tc>, window_params = [{transform_indices = @transform_0, window_bounds = array<i64: 128, 128>}, {pipeline_mode = #tpu.pipeline_mode<synchronous>, transform_indices = @transform_1, window_bounds = array<i64: 128, 128>}, {pipeline_mode = #tpu.pipeline_mode<synchronous>, transform_indices = @transform_2, window_bounds = array<i64: 128, 128>}, {pipeline_mode = #tpu.pipeline_mode<synchronous>, transform_indices = @transform_3, window_bounds = array<i64: 1, 128>}, {transform_indices = @transform_4, window_bounds = array<i64: 128, 128>}]} {
    %c0_i32 = arith.constant 0 : i32
    %0 = arith.cmpi eq, %arg1, %c0_i32 : i32
    %1 = arith.extui %0 : i1 to i32
    %c0_i32_0 = arith.constant 0 : i32
    %2 = arith.cmpi ne, %1, %c0_i32_0 : i32
    scf.if %2 {
      %cst_12 = arith.constant 0.000000e+00 : f32
      %18 = vector.broadcast %cst_12 : f32 to vector<128x128xf32>
      %c0_13 = arith.constant 0 : index
      %c0_14 = arith.constant 0 : index
      %19 = vector.load %arg7[%c0_13, %c0_14] : memref<128x128xf32, #tpu.memory_space<vmem>>, vector<128x128xf32>
      tpu.vector_store %arg7[%c0_13, %c0_14], %18 {strides = array<i32>} : memref<128x128xf32, #tpu.memory_space<vmem>>, vector<128x128xf32>,
    } else {
    }
    %c128_i32 = arith.constant 128 : i32
    %3 = arith.muli %arg1, %c128_i32 : i32
    %4 = tpu.assume_multiple %3, 128 : i32
    %5 = arith.index_cast %4 : i32 to index
    %c0 = arith.constant 0 : index
    %6 = vector.load %arg3[%5, %c0] : memref<128x128xbf16, #tpu.memory_space<vmem>>, vector<128x128xbf16>
    %c0_1 = arith.constant 0 : index
    %c0_2 = arith.constant 0 : index
    %7 = vector.load %arg4[%c0_1, %c0_2] : memref<128x128xbf16, #tpu.memory_space<vmem>>, vector<128x128xbf16>
    %cst = arith.constant dense<0.000000e+00> : vector<128x128xf32>
    %8 = tpu.matmul %6, %7, %cst {dimension_numbers = #tpu.dot_dimension_numbers<[1], [0], [0], [1], [0, 0, 1, 1], [], []>} : vector<128x128xbf16>, vector<128x128xbf16>, vector<128x128xf32> -> vector<128x128xf32>
    %c0_3 = arith.constant 0 : index
    %c0_4 = arith.constant 0 : index
    %9 = vector.load %arg7[%c0_3, %c0_4] : memref<128x128xf32, #tpu.memory_space<vmem>>, vector<128x128xf32>
    %c0_5 = arith.constant 0 : index
    %c0_6 = arith.constant 0 : index
    %10 = vector.load %arg2[%c0_5, %c0_6] : memref<128x128xbf16, #tpu.memory_space<vmem>>, vector<128x128xbf16>
    %11 = arith.truncf %8 : vector<128x128xf32> to vector<128x128xbf16>
    %cst_7 = arith.constant dense<0.000000e+00> : vector<128x128xf32>
    %12 = tpu.matmul %10, %11, %cst_7 {dimension_numbers = #tpu.dot_dimension_numbers<[1], [0], [0], [1], [0, 0, 1, 1], [], []>} : vector<128x128xbf16>, vector<128x128xbf16>, vector<128x128xf32> -> vector<128x128xf32>
    %13 = arith.addf %9, %12 : vector<128x128xf32>
    %c0_8 = arith.constant 0 : index
    %c0_9 = arith.constant 0 : index
    %14 = vector.load %arg7[%c0_8, %c0_9] : memref<128x128xf32, #tpu.memory_space<vmem>>, vector<128x128xf32>
    tpu.vector_store %arg7[%c0_8, %c0_9], %13 {strides = array<i32>} : memref<128x128xf32, #tpu.memory_space<vmem>>, vector<128x128xf32>,
    %c0_i32_10 = arith.constant 0 : i32
    %15 = arith.cmpi eq, %arg1, %c0_i32_10 : i32
    %16 = arith.extui %15 : i1 to i32
    %c0_i32_11 = arith.constant 0 : i32
    %17 = arith.cmpi ne, %16, %c0_i32_11 : i32
    scf.if %17 {
      %c0_12 = arith.constant 0 : index
      %c0_13 = arith.constant 0 : index
      %18 = vector.load %arg7[%c0_12, %c0_13] : memref<128x128xf32, #tpu.memory_space<vmem>>, vector<128x128xf32>
      %c0_14 = arith.constant 0 : index
      %c0_15 = arith.constant 0 : index
      %19 = vector.load %arg5[%c0_14, %c0_15] : memref<1x128xf32, #tpu.memory_space<vmem>>, vector<1x128xf32>
      %20 = vector.broadcast %19 : vector<1x128xf32> to vector<128x128xf32>
      %21 = arith.addf %18, %20 : vector<128x128xf32>
      %cst_16 = arith.constant 0.000000e+00 : f32
      %22 = vector.broadcast %cst_16 : f32 to vector<128x128xf32>
      %23 = arith.maximumf %21, %22 : vector<128x128xf32>
      %24 = arith.truncf %23 : vector<128x128xf32> to vector<128x128xbf16>
      %c0_17 = arith.constant 0 : index
      %c0_18 = arith.constant 0 : index
      %25 = vector.load %arg6[%c0_17, %c0_18] : memref<128x128xbf16, #tpu.memory_space<vmem>>, vector<128x128xbf16>
      tpu.vector_store %arg6[%c0_17, %c0_18], %24 {strides = array<i32>} : memref<128x128xbf16, #tpu.memory_space<vmem>>, vector<128x128xbf16>,
    } else {
    }
    return
  }
  func.func @transform_0(%arg0: i32, %arg1: i32) -> (i32, i32) {
    %c0_i32 = arith.constant 0 : i32
    return %arg0, %arg1 : i32, i32
  }
  func.func @transform_1(%arg0: i32, %arg1: i32) -> (i32, i32) {
    %c0_i32 = arith.constant 0 : i32
    %c0_i32_0 = arith.constant 0 : i32
    %c0_i32_1 = arith.constant 0 : i32
    return %c0_i32, %c0_i32_0 : i32, i32
  }
  func.func @transform_2(%arg0: i32, %arg1: i32) -> (i32, i32) {
    %c0_i32 = arith.constant 0 : i32
    %c0_i32_0 = arith.constant 0 : i32
    %c0_i32_1 = arith.constant 0 : i32
    return %c0_i32, %c0_i32_0 : i32, i32
  }
  func.func @transform_3(%arg0: i32, %arg1: i32) -> (i32, i32) {
    %c0_i32 = arith.constant 0 : i32
    %c0_i32_0 = arith.constant 0 : i32
    %c0_i32_1 = arith.constant 0 : i32
    return %c0_i32, %c0_i32_0 : i32, i32
  }
  func.func @transform_4(%arg0: i32, %arg1: i32) -> (i32, i32) {
    %c0_i32 = arith.constant 0 : i32
    %c0_i32_0 = arith.constant 0 : i32
    return %arg0, %c0_i32 : i32, i32
  }
}

module attributes {stable_mosaic.version = 11 : i64} {
  func.func @_gcn_layer_kernel(%arg0: i32, %arg1: i32, %arg2: memref<128x128xbf16, #tpu.memory_space<vmem>>, %arg3: memref<128x128xbf16, #tpu.memory_space<vmem>>, %arg4: memref<128x128xbf16, #tpu.memory_space<vmem>>, %arg5: memref<1x128xf32, #tpu.memory_space<vmem>>, %arg6: memref<128x128xf32, #tpu.memory_space<vmem>>, %arg7: memref<128x128xf32, #tpu.memory_space<vmem>>) attributes {dimension_semantics = [#tpu.dimension_semantics<parallel>, #tpu.dimension_semantics<arbitrary>], iteration_bounds = array<i64: 1, 1>, scalar_prefetch = 0 : i64, scratch_operands = 1 : i64, tpu.core_type = #tpu.core_type<tc>, window_params = [{transform_indices = @transform_0, window_bounds = array<i64: 128, 128>}, {pipeline_mode = #tpu.pipeline_mode<synchronous>, transform_indices = @transform_1, window_bounds = array<i64: 128, 128>}, {pipeline_mode = #tpu.pipeline_mode<synchronous>, transform_indices = @transform_2, window_bounds = array<i64: 128, 128>}, {pipeline_mode = #tpu.pipeline_mode<synchronous>, transform_indices = @transform_3, window_bounds = array<i64: 1, 128>}, {transform_indices = @transform_4, window_bounds = array<i64: 128, 128>}]} {
    %c0_i32 = arith.constant 0 : i32
    %0 = arith.cmpi eq, %arg1, %c0_i32 : i32
    %1 = arith.extui %0 : i1 to i32
    %c0_i32_0 = arith.constant 0 : i32
    %2 = arith.cmpi ne, %1, %c0_i32_0 : i32
    scf.if %2 {
      %cst_12 = arith.constant 0.000000e+00 : f32
      %18 = vector.broadcast %cst_12 : f32 to vector<128x128xf32>
      %c0_13 = arith.constant 0 : index
      %c0_14 = arith.constant 0 : index
      %19 = vector.load %arg7[%c0_13, %c0_14] : memref<128x128xf32, #tpu.memory_space<vmem>>, vector<128x128xf32>
      tpu.vector_store %arg7[%c0_13, %c0_14], %18 {strides = array<i32>} : memref<128x128xf32, #tpu.memory_space<vmem>>, vector<128x128xf32>,
    } else {
    }
    %c128_i32 = arith.constant 128 : i32
    %3 = arith.muli %arg1, %c128_i32 : i32
    %4 = tpu.assume_multiple %3, 128 : i32
    %5 = arith.index_cast %4 : i32 to index
    %c0 = arith.constant 0 : index
    %6 = vector.load %arg3[%5, %c0] : memref<128x128xbf16, #tpu.memory_space<vmem>>, vector<128x128xbf16>
    %c0_1 = arith.constant 0 : index
    %c0_2 = arith.constant 0 : index
    %7 = vector.load %arg4[%c0_1, %c0_2] : memref<128x128xbf16, #tpu.memory_space<vmem>>, vector<128x128xbf16>
    %cst = arith.constant dense<0.000000e+00> : vector<128x128xf32>
    %8 = tpu.matmul %6, %7, %cst {dimension_numbers = #tpu.dot_dimension_numbers<[1], [0], [0], [1], [0, 0, 1, 1], [], []>} : vector<128x128xbf16>, vector<128x128xbf16>, vector<128x128xf32> -> vector<128x128xf32>
    %c0_3 = arith.constant 0 : index
    %c0_4 = arith.constant 0 : index
    %9 = vector.load %arg7[%c0_3, %c0_4] : memref<128x128xf32, #tpu.memory_space<vmem>>, vector<128x128xf32>
    %c0_5 = arith.constant 0 : index
    %c0_6 = arith.constant 0 : index
    %10 = vector.load %arg2[%c0_5, %c0_6] : memref<128x128xbf16, #tpu.memory_space<vmem>>, vector<128x128xbf16>
    %11 = arith.truncf %8 : vector<128x128xf32> to vector<128x128xbf16>
    %cst_7 = arith.constant dense<0.000000e+00> : vector<128x128xf32>
    %12 = tpu.matmul %10, %11, %cst_7 {dimension_numbers = #tpu.dot_dimension_numbers<[1], [0], [0], [1], [0, 0, 1, 1], [], []>} : vector<128x128xbf16>, vector<128x128xbf16>, vector<128x128xf32> -> vector<128x128xf32>
    %13 = arith.addf %9, %12 : vector<128x128xf32>
    %c0_8 = arith.constant 0 : index
    %c0_9 = arith.constant 0 : index
    %14 = vector.load %arg7[%c0_8, %c0_9] : memref<128x128xf32, #tpu.memory_space<vmem>>, vector<128x128xf32>
    tpu.vector_store %arg7[%c0_8, %c0_9], %13 {strides = array<i32>} : memref<128x128xf32, #tpu.memory_space<vmem>>, vector<128x128xf32>,
    %c0_i32_10 = arith.constant 0 : i32
    %15 = arith.cmpi eq, %arg1, %c0_i32_10 : i32
    %16 = arith.extui %15 : i1 to i32
    %c0_i32_11 = arith.constant 0 : i32
    %17 = arith.cmpi ne, %16, %c0_i32_11 : i32
    scf.if %17 {
      %c0_12 = arith.constant 0 : index
      %c0_13 = arith.constant 0 : index
      %18 = vector.load %arg7[%c0_12, %c0_13] : memref<128x128xf32, #tpu.memory_space<vmem>>, vector<128x128xf32>
      %c0_14 = arith.constant 0 : index
      %c0_15 = arith.constant 0 : index
      %19 = vector.load %arg5[%c0_14, %c0_15] : memref<1x128xf32, #tpu.memory_space<vmem>>, vector<1x128xf32>
      %20 = vector.broadcast %19 : vector<1x128xf32> to vector<128x128xf32>
      %21 = arith.addf %18, %20 : vector<128x128xf32>
      %22 = arith.negf %21 : vector<128x128xf32>
      %23 = math.exp %22 : vector<128x128xf32>
      %cst_16 = arith.constant 1.000000e+00 : f32
      %24 = vector.broadcast %cst_16 : f32 to vector<128x128xf32>
      %25 = arith.addf %24, %23 : vector<128x128xf32>
      %26 = arith.divf %24, %25 : vector<128x128xf32>
      %c0_17 = arith.constant 0 : index
      %c0_18 = arith.constant 0 : index
      %27 = vector.load %arg6[%c0_17, %c0_18] : memref<128x128xf32, #tpu.memory_space<vmem>>, vector<128x128xf32>
      tpu.vector_store %arg6[%c0_17, %c0_18], %26 {strides = array<i32>} : memref<128x128xf32, #tpu.memory_space<vmem>>, vector<128x128xf32>,
    } else {
    }
    return
  }
  func.func @transform_0(%arg0: i32, %arg1: i32) -> (i32, i32) {
    %c0_i32 = arith.constant 0 : i32
    return %arg0, %arg1 : i32, i32
  }
  func.func @transform_1(%arg0: i32, %arg1: i32) -> (i32, i32) {
    %c0_i32 = arith.constant 0 : i32
    %c0_i32_0 = arith.constant 0 : i32
    %c0_i32_1 = arith.constant 0 : i32
    return %c0_i32, %c0_i32_0 : i32, i32
  }
  func.func @transform_2(%arg0: i32, %arg1: i32) -> (i32, i32) {
    %c0_i32 = arith.constant 0 : i32
    %c0_i32_0 = arith.constant 0 : i32
    %c0_i32_1 = arith.constant 0 : i32
    return %c0_i32, %c0_i32_0 : i32, i32
  }
  func.func @transform_3(%arg0: i32, %arg1: i32) -> (i32, i32) {
    %c0_i32 = arith.constant 0 : i32
    %c0_i32_0 = arith.constant 0 : i32
    %c0_i32_1 = arith.constant 0 : i32
    return %c0_i32, %c0_i32_0 : i32, i32
  }
  func.func @transform_4(%arg0: i32, %arg1: i32) -> (i32, i32) {
    %c0_i32 = arith.constant 0 : i32
    %c0_i32_0 = arith.constant 0 : i32
    return %arg0, %c0_i32 : i32, i32
  }
}

</mosaic_0001>

<bundles_post_ra>
// kernel: gcn_forward.2
= control target key start
LH: loop header
LB: loop body
LE: loop exit
PB: predicated region body
PF: predicated region fallthrough
CT: control target
= control target key end

     0   :  { %s977_s2 = inlined_call_operand.vmem [shape: bf16[128,128], index: 2, kind: input, shape index: {}]   ;;  %s978_s1 = inlined_call_operand.vmem [shape: bf16[128,128], index: 1, kind: input, shape index: {}]   ;;  %s979_s0 = inlined_call_operand.vmem [shape: bf16[128,128], index: 0, kind: input, shape index: {}]   ;;  %s980_s3 = inlined_call_operand.vmem [shape: f32[1,128], index: 3, kind: input, shape index: {}]   ;;  %s981_s4 = inlined_call_operand.vmem [shape: bf16[128,128], index: 4, kind: output, shape index: {}]  }
   0x1   :  { %v829_v0 = vld [vmem:[%s977_s2] sm:$0xff]   ;;  %v830_v1 = vld [vmem:[%s977_s2 + $0x8] sm:$0xff]   ;;  %v831_v2 = vld [vmem:[%s977_s2 + $0x10] sm:$0xff]  }
   0x2   :  { %765 = vmatprep.subr.bf16.mxu0 %v829_v0  ;;  %v832_v3 = vld [vmem:[%s977_s2 + $0x18] sm:$0xff]   ;;  %v837_v4 = vld [vmem:[%s978_s1] sm:$0xff]   ;;  %v834_v6 = vld [vmem:[%s977_s2 + $0x28] sm:$0xff]  }
   0x3   :  { %766 = vmatpush3.bf16.msra.mxu0 %v829_v0  ;;  %781 = vmatprep.mubr.bf16.mxu0 %v837_v4  ;;  %v833_v5 = vld [vmem:[%s977_s2 + $0x20] sm:$0xff]   ;;  %v835_v7 = vld [vmem:[%s977_s2 + $0x30] sm:$0xff]   ;;  %v836_v8 = vld [vmem:[%s977_s2 + $0x38] sm:$0xff]  }
   0x4   :  { %767 = vmatprep.subr.bf16.mxu0 %v830_v1  ;;  %v838_v9 = vld [vmem:[%s978_s1 + $0x8] sm:$0xff]   ;;  %v839_v10 = vld [vmem:[%s978_s1 + $0x10] sm:$0xff]   ;;  %v840_v11 = vld [vmem:[%s978_s1 + $0x18] sm:$0xff]  }
   0x5   :  { %v841_v12 = vld [vmem:[%s978_s1 + $0x20] sm:$0xff]   ;;  %v842_v13 = vld [vmem:[%s978_s1 + $0x28] sm:$0xff]   ;;  %v843_v14 = vld [vmem:[%s978_s1 + $0x30] sm:$0xff]  }
   0x6   :  { %v844_v15 = vld [vmem:[%s978_s1 + $0x38] sm:$0xff]   ;;  %v845_v16 = vld [vmem:[%s979_s0] sm:$0xff]   ;;  %v846_v41 = vld [vmem:[%s979_s0 + $0x8] sm:$0xff]  }
   0x7   :  { %768 = vmatpush3.bf16.msra.mxu0 %v830_v1  ;;  %813 = vmatprep.mubr.bf16.mxu1 %v845_v16  ;;  %v847_v42 = vld [vmem:[%s979_s0 + $0x10] sm:$0xff]   ;;  %v848_v43 = vld [vmem:[%s979_s0 + $0x18] sm:$0xff]   ;;  %v849_v44 = vld [vmem:[%s979_s0 + $0x20] sm:$0xff]  }
   0x8   :  { %769 = vmatprep.subr.bf16.mxu0 %v831_v2  ;;  %v850_v45 = vld [vmem:[%s979_s0 + $0x28] sm:$0xff]   ;;  %v851_v46 = vld [vmem:[%s979_s0 + $0x30] sm:$0xff]   ;;  %v852_v47 = vld [vmem:[%s979_s0 + $0x38] sm:$0xff]  }
   0x9   :  { %v653_v48 = vld [vmem:[%s980_s3] ss:$0 sm:$0xff] }
   0xb   :  { %770 = vmatpush3.bf16.msra.mxu0 %v831_v2 }
   0xc   :  { %771 = vmatprep.subr.bf16.mxu0 %v832_v3 }
   0xf   :  { %772 = vmatpush3.bf16.msra.mxu0 %v832_v3 }
  0x10   :  { %773 = vmatprep.subr.bf16.mxu0 %v833_v5 }
  0x13   :  { %774 = vmatpush3.bf16.msra.mxu0 %v833_v5 }
  0x14   :  { %775 = vmatprep.subr.bf16.mxu0 %v834_v6 }
  0x17   :  { %776 = vmatpush3.bf16.msra.mxu0 %v834_v6 }
  0x18   :  { %777 = vmatprep.subr.bf16.mxu0 %v835_v7 }
  0x1b   :  { %778 = vmatpush3.bf16.msra.mxu0 %v835_v7 }
  0x1c   :  { %779 = vmatprep.subr.bf16.mxu0 %v836_v8 }
  0x1f   :  { %780 = vmatpush3.bf16.msra.mxu0 %v836_v8 }
  0x22   :  { %782 = vmatmul.mubr.bf16.vlgmr.msra.gmra.mrb[0].mxu0 %v838_v9 }
  0x23   :  { %785 = vmatprep.mubr.bf16.mxu0 %v839_v10 }
  0x2a   :  { %786 = vmatmul.mubr.bf16.gmra.mrb[4].mxu0 %v840_v11 }
  0x2b   :  { %789 = vmatprep.mubr.bf16.mxu0 %v841_v12 }
  0x32   :  { %790 = vmatmul.mubr.bf16.gmra.mrb[8].mxu0 %v842_v13 }
  0x33   :  { %793 = vmatprep.mubr.bf16.mxu0 %v843_v14 }
  0x3a   :  { %794 = vmatmul.mubr.bf16.gmra.mrb[12].mxu0 %v844_v15 }
  0xf5   :  { %v783_v17 = vpop.f32.mrb[0].mxu0 }
  0xf6   :  { %v205_v18 = vpop.f32.mrb[1].mxu0 }
  0xf7   :  { %v784_v19 = vpop.f32.mrb[2].mxu0 }
  0xf8   :  { %v301_v20 = vpack.c.bf16 %v784_v19, %v783_v17  ;;  %v208_v21 = vpop.f32.mrb[3].mxu0 }
  0xf9   :  { %v300_v22 = vpack.c.bf16 %v208_v21, %v205_v18 }
  0xfb   :  { %797 = vmatprep.subr.bf16.mxu1 %v300_v22 }
  0xfc   :  { %798 = vmatpush3.bf16.msra.mxu1 %v300_v22 }
  0xfd   :  { %v787_v23 = vpop.f32.mrb[4].mxu0  ;;  %799 = vmatprep.subr.bf16.mxu1 %v301_v20 }
  0xfe   :  { %v221_v24 = vpop.f32.mrb[5].mxu0 }
  0xff   :  { %v788_v25 = vpop.f32.mrb[6].mxu0 }
 0x100   :  { %v303_v26 = vpack.c.bf16 %v788_v25, %v787_v23  ;;  %v224_v27 = vpop.f32.mrb[7].mxu0  ;;  %800 = vmatpush3.bf16.msra.mxu1 %v301_v20 }
 0x101   :  { %v302_v28 = vpack.c.bf16 %v224_v27, %v221_v24 }
 0x103   :  { %801 = vmatprep.subr.bf16.mxu1 %v302_v28 }
 0x104   :  { %802 = vmatpush3.bf16.msra.mxu1 %v302_v28 }
 0x105   :  { %v791_v29 = vpop.f32.mrb[8].mxu0  ;;  %803 = vmatprep.subr.bf16.mxu1 %v303_v26 }
 0x106   :  { %v237_v30 = vpop.f32.mrb[9].mxu0 }
 0x107   :  { %v792_v31 = vpop.f32.mrb[10].mxu0 }
 0x108   :  { %v305_v32 = vpack.c.bf16 %v792_v31, %v791_v29  ;;  %v240_v33 = vpop.f32.mrb[11].mxu0  ;;  %804 = vmatpush3.bf16.msra.mxu1 %v303_v26 }
 0x109   :  { %v304_v34 = vpack.c.bf16 %v240_v33, %v237_v30 }
 0x10b   :  { %805 = vmatprep.subr.bf16.mxu1 %v304_v34 }
 0x10c   :  { %806 = vmatpush3.bf16.msra.mxu1 %v304_v34 }
 0x10d   :  { %v795_v35 = vpop.f32.mrb[12].mxu0  ;;  %807 = vmatprep.subr.bf16.mxu1 %v305_v32 }
 0x10e   :  { %v253_v36 = vpop.f32.mrb[13].mxu0 }
 0x10f   :  { %v796_v37 = vpop.f32.mrb[14].mxu0 }
 0x110   :  { %v307_v38 = vpack.c.bf16 %v796_v37, %v795_v35  ;;  %v256_v39 = vpop.f32.mrb[15].mxu0  ;;  %808 = vmatpush3.bf16.msra.mxu1 %v305_v32 }
 0x111   :  { %v306_v40 = vpack.c.bf16 %v256_v39, %v253_v36 }
 0x113   :  { %809 = vmatprep.subr.bf16.mxu1 %v306_v40 }
 0x114   :  { %810 = vmatpush3.bf16.msra.mxu1 %v306_v40 }
 0x115   :  { %811 = vmatprep.subr.bf16.mxu1 %v307_v38 }
 0x118   :  { %812 = vmatpush3.bf16.msra.mxu1 %v307_v38 }
 0x11b   :  { %814 = vmatmul.mubr.bf16.vlgmr.msra.gmra.mrb[0].mxu1 %v846_v41 }
 0x11c   :  { %817 = vmatprep.mubr.bf16.mxu1 %v847_v42 }
 0x123   :  { %818 = vmatmul.mubr.bf16.gmra.mrb[4].mxu1 %v848_v43 }
 0x124   :  { %821 = vmatprep.mubr.bf16.mxu1 %v849_v44 }
 0x12b   :  { %822 = vmatmul.mubr.bf16.gmra.mrb[8].mxu1 %v850_v45 }
 0x12c   :  { %825 = vmatprep.mubr.bf16.mxu1 %v851_v46 }
 0x133   :  { %826 = vmatmul.mubr.bf16.gmra.mrb[12].mxu1 %v852_v47 }
 0x1ee   :  { %v815_v49 = vpop.f32.mrb[0].mxu1 }
 0x1ef   :  { %v513_v50 = vadd.f32 %v815_v49, %v653_v48  ;;  %v390_v51 = vpop.f32.mrb[1].mxu1 }
 0x1f0   :  { %v511_v52 = vadd.f32 %v653_v48, %v390_v51  ;;  %v816_v53 = vpop.f32.mrb[2].mxu1 }
 0x1f1   :  { %v514_v54 = vadd.f32 %v816_v53, %v653_v48  ;;  %v393_v55 = vpop.f32.mrb[3].mxu1  ;;  %v529_v57 = vmax.f32 %v513_v50, 0.0 }
 0x1f2   :  { %v512_v56 = vadd.f32 %v653_v48, %v393_v55  ;;  %v527_v59 = vmax.f32 %v511_v52, 0.0 }
 0x1f3   :  { %v530_v58 = vmax.f32 %v514_v54, 0.0 }
 0x1f4   :  { %v528_v60 = vmax.f32 %v512_v56, 0.0 }
 0x1f5   :  { %v694_v61 = vpack.c.bf16 %v530_v58, %v529_v57 }
 0x1f6   :  { %v689_v62 = vpack.c.bf16 %v528_v60, %v527_v59  ;;  %v819_v63 = vpop.f32.mrb[4].mxu1 }
 0x1f7   :  { %726 = vst [vmem:[%s981_s4 + $0x8] sm:$0xff] %v694_v61   ;;  %v517_v0 = vadd.f32 %v819_v63, %v653_v48  ;;  %v406_v1 = vpop.f32.mrb[5].mxu1 }
 0x1f8   :  { %690 = vst [vmem:[%s981_s4] sm:$0xff] %v689_v62   ;;  %v515_v2 = vadd.f32 %v653_v48, %v406_v1  ;;  %v820_v3 = vpop.f32.mrb[6].mxu1 }
 0x1f9   :  { %v518_v4 = vadd.f32 %v820_v3, %v653_v48  ;;  %v409_v5 = vpop.f32.mrb[7].mxu1  ;;  %v533_v7 = vmax.f32 %v517_v0, 0.0 }
 0x1fa   :  { %v516_v6 = vadd.f32 %v653_v48, %v409_v5  ;;  %v531_v9 = vmax.f32 %v515_v2, 0.0 }
 0x1fb   :  { %v534_v8 = vmax.f32 %v518_v4, 0.0 }
 0x1fc   :  { %v532_v10 = vmax.f32 %v516_v6, 0.0 }
 0x1fd   :  { %v704_v11 = vpack.c.bf16 %v534_v8, %v533_v7 }
 0x1fe   :  { %v699_v12 = vpack.c.bf16 %v532_v10, %v531_v9  ;;  %v823_v13 = vpop.f32.mrb[8].mxu1 }
 0x1ff   :  { %728 = vst [vmem:[%s981_s4 + $0x18] sm:$0xff] %v704_v11   ;;  %v521_v14 = vadd.f32 %v823_v13, %v653_v48  ;;  %v422_v15 = vpop.f32.mrb[9].mxu1 }
 0x200   :  { %727 = vst [vmem:[%s981_s4 + $0x10] sm:$0xff] %v699_v12   ;;  %v519_v16 = vadd.f32 %v653_v48, %v422_v15  ;;  %v824_v17 = vpop.f32.mrb[10].mxu1 }
 0x201   :  { %v522_v18 = vadd.f32 %v824_v17, %v653_v48  ;;  %v425_v19 = vpop.f32.mrb[11].mxu1  ;;  %v537_v21 = vmax.f32 %v521_v14, 0.0 }
 0x202   :  { %v520_v20 = vadd.f32 %v653_v48, %v425_v19  ;;  %v535_v23 = vmax.f32 %v519_v16, 0.0 }
 0x203   :  { %v538_v22 = vmax.f32 %v522_v18, 0.0 }
 0x204   :  { %v536_v24 = vmax.f32 %v520_v20, 0.0 }
 0x205   :  { %v714_v25 = vpack.c.bf16 %v538_v22, %v537_v21 }
 0x206   :  { %v709_v26 = vpack.c.bf16 %v536_v24, %v535_v23  ;;  %v827_v27 = vpop.f32.mrb[12].mxu1 }
 0x207   :  { %730 = vst [vmem:[%s981_s4 + $0x28] sm:$0xff] %v714_v25   ;;  %v525_v28 = vadd.f32 %v827_v27, %v653_v48  ;;  %v438_v29 = vpop.f32.mrb[13].mxu1 }
 0x208   :  { %729 = vst [vmem:[%s981_s4 + $0x20] sm:$0xff] %v709_v26   ;;  %v523_v30 = vadd.f32 %v653_v48, %v438_v29  ;;  %v828_v31 = vpop.f32.mrb[14].mxu1 }
 0x209   :  { %v526_v32 = vadd.f32 %v828_v31, %v653_v48  ;;  %v441_v33 = vpop.f32.mrb[15].mxu1  ;;  %v541_v35 = vmax.f32 %v525_v28, 0.0 }
 0x20a   :  { %v524_v34 = vadd.f32 %v653_v48, %v441_v33  ;;  %v539_v37 = vmax.f32 %v523_v30, 0.0 }
 0x20b   :  { %v542_v36 = vmax.f32 %v526_v32, 0.0 }
 0x20c   :  { %v540_v38 = vmax.f32 %v524_v34, 0.0 }
 0x20d   :  { %v724_v39 = vpack.c.bf16 %v542_v36, %v541_v35 }
 0x20e   :  { %v719_v40 = vpack.c.bf16 %v540_v38, %v539_v37 }
 0x20f   :  { %732 = vst [vmem:[%s981_s4 + $0x38] sm:$0xff] %v724_v39  }
 0x210   :  { %731 = vst [vmem:[%s981_s4 + $0x30] sm:$0xff] %v719_v40  }

// kernel: gcn_forward.3
= control target key start
LH: loop header
LB: loop body
LE: loop exit
PB: predicated region body
PF: predicated region fallthrough
CT: control target
= control target key end

     0   :  { %s1036_s2 = inlined_call_operand.vmem [shape: bf16[128,128], index: 2, kind: input, shape index: {}]   ;;  %s1037_s1 = inlined_call_operand.vmem [shape: bf16[128,128], index: 1, kind: input, shape index: {}]   ;;  %s1038_s0 = inlined_call_operand.vmem [shape: bf16[128,128], index: 0, kind: input, shape index: {}]   ;;  %s1039_s3 = inlined_call_operand.vmem [shape: f32[1,128], index: 3, kind: input, shape index: {}]   ;;  %s1040_s4 = inlined_call_operand.vmem [shape: f32[128,128], index: 4, kind: output, shape index: {}]  }
   0x1   :  { %v782_v0 = vld [vmem:[%s1036_s2] sm:$0xff]   ;;  %v783_v1 = vld [vmem:[%s1036_s2 + $0x8] sm:$0xff]   ;;  %v784_v2 = vld [vmem:[%s1036_s2 + $0x10] sm:$0xff]  }
   0x2   :  { %718 = vmatprep.subr.bf16.mxu0 %v782_v0  ;;  %v785_v3 = vld [vmem:[%s1036_s2 + $0x18] sm:$0xff]   ;;  %v790_v4 = vld [vmem:[%s1037_s1] sm:$0xff]   ;;  %v787_v6 = vld [vmem:[%s1036_s2 + $0x28] sm:$0xff]  }
   0x3   :  { %719 = vmatpush3.bf16.msra.mxu0 %v782_v0  ;;  %734 = vmatprep.mubr.bf16.mxu0 %v790_v4  ;;  %v786_v5 = vld [vmem:[%s1036_s2 + $0x20] sm:$0xff]   ;;  %v788_v7 = vld [vmem:[%s1036_s2 + $0x30] sm:$0xff]   ;;  %v789_v8 = vld [vmem:[%s1036_s2 + $0x38] sm:$0xff]  }
   0x4   :  { %720 = vmatprep.subr.bf16.mxu0 %v783_v1  ;;  %v791_v9 = vld [vmem:[%s1037_s1 + $0x8] sm:$0xff]   ;;  %v792_v10 = vld [vmem:[%s1037_s1 + $0x10] sm:$0xff]   ;;  %v793_v11 = vld [vmem:[%s1037_s1 + $0x18] sm:$0xff]  }
   0x5   :  { %v794_v12 = vld [vmem:[%s1037_s1 + $0x20] sm:$0xff]   ;;  %v795_v13 = vld [vmem:[%s1037_s1 + $0x28] sm:$0xff]   ;;  %v796_v14 = vld [vmem:[%s1037_s1 + $0x30] sm:$0xff]  }
   0x6   :  { %v797_v15 = vld [vmem:[%s1037_s1 + $0x38] sm:$0xff]   ;;  %v798_v16 = vld [vmem:[%s1038_s0] sm:$0xff]   ;;  %v799_v41 = vld [vmem:[%s1038_s0 + $0x8] sm:$0xff]  }
   0x7   :  { %721 = vmatpush3.bf16.msra.mxu0 %v783_v1  ;;  %766 = vmatprep.mubr.bf16.mxu1 %v798_v16  ;;  %v800_v42 = vld [vmem:[%s1038_s0 + $0x10] sm:$0xff]   ;;  %v801_v43 = vld [vmem:[%s1038_s0 + $0x18] sm:$0xff]   ;;  %v802_v44 = vld [vmem:[%s1038_s0 + $0x20] sm:$0xff]  }
   0x8   :  { %722 = vmatprep.subr.bf16.mxu0 %v784_v2  ;;  %v803_v45 = vld [vmem:[%s1038_s0 + $0x28] sm:$0xff]   ;;  %v804_v46 = vld [vmem:[%s1038_s0 + $0x30] sm:$0xff]   ;;  %v805_v47 = vld [vmem:[%s1038_s0 + $0x38] sm:$0xff]  }
   0x9   :  { %v970_v48 = vld [vmem:[%s1039_s3] ss:$0 sm:$0xff] }
   0xb   :  { %723 = vmatpush3.bf16.msra.mxu0 %v784_v2 }
   0xc   :  { %724 = vmatprep.subr.bf16.mxu0 %v785_v3 }
   0xf   :  { %725 = vmatpush3.bf16.msra.mxu0 %v785_v3 }
  0x10   :  { %726 = vmatprep.subr.bf16.mxu0 %v786_v5 }
  0x13   :  { %727 = vmatpush3.bf16.msra.mxu0 %v786_v5 }
  0x14   :  { %728 = vmatprep.subr.bf16.mxu0 %v787_v6 }
  0x17   :  { %729 = vmatpush3.bf16.msra.mxu0 %v787_v6 }
  0x18   :  { %730 = vmatprep.subr.bf16.mxu0 %v788_v7 }
  0x1b   :  { %731 = vmatpush3.bf16.msra.mxu0 %v788_v7 }
  0x1c   :  { %732 = vmatprep.subr.bf16.mxu0 %v789_v8 }
  0x1f   :  { %733 = vmatpush3.bf16.msra.mxu0 %v789_v8 }
  0x22   :  { %735 = vmatmul.mubr.bf16.vlgmr.msra.gmra.mrb[0].mxu0 %v791_v9 }
  0x23   :  { %738 = vmatprep.mubr.bf16.mxu0 %v792_v10 }
  0x2a   :  { %739 = vmatmul.mubr.bf16.gmra.mrb[4].mxu0 %v793_v11 }
  0x2b   :  { %742 = vmatprep.mubr.bf16.mxu0 %v794_v12 }
  0x32   :  { %743 = vmatmul.mubr.bf16.gmra.mrb[8].mxu0 %v795_v13 }
  0x33   :  { %746 = vmatprep.mubr.bf16.mxu0 %v796_v14 }
  0x3a   :  { %747 = vmatmul.mubr.bf16.gmra.mrb[12].mxu0 %v797_v15 }
  0xf5   :  { %v736_v17 = vpop.f32.mrb[0].mxu0 }
  0xf6   :  { %v205_v18 = vpop.f32.mrb[1].mxu0 }
  0xf7   :  { %v737_v19 = vpop.f32.mrb[2].mxu0 }
  0xf8   :  { %v301_v20 = vpack.c.bf16 %v737_v19, %v736_v17  ;;  %v208_v21 = vpop.f32.mrb[3].mxu0 }
  0xf9   :  { %v300_v22 = vpack.c.bf16 %v208_v21, %v205_v18 }
  0xfb   :  { %750 = vmatprep.subr.bf16.mxu1 %v300_v22 }
  0xfc   :  { %751 = vmatpush3.bf16.msra.mxu1 %v300_v22 }
  0xfd   :  { %v740_v23 = vpop.f32.mrb[4].mxu0  ;;  %752 = vmatprep.subr.bf16.mxu1 %v301_v20 }
  0xfe   :  { %v221_v24 = vpop.f32.mrb[5].mxu0 }
  0xff   :  { %v741_v25 = vpop.f32.mrb[6].mxu0 }
 0x100   :  { %v303_v26 = vpack.c.bf16 %v741_v25, %v740_v23  ;;  %v224_v27 = vpop.f32.mrb[7].mxu0  ;;  %753 = vmatpush3.bf16.msra.mxu1 %v301_v20 }
 0x101   :  { %v302_v28 = vpack.c.bf16 %v224_v27, %v221_v24 }
 0x103   :  { %754 = vmatprep.subr.bf16.mxu1 %v302_v28 }
 0x104   :  { %755 = vmatpush3.bf16.msra.mxu1 %v302_v28 }
 0x105   :  { %v744_v29 = vpop.f32.mrb[8].mxu0  ;;  %756 = vmatprep.subr.bf16.mxu1 %v303_v26 }
 0x106   :  { %v237_v30 = vpop.f32.mrb[9].mxu0 }
 0x107   :  { %v745_v31 = vpop.f32.mrb[10].mxu0 }
 0x108   :  { %v305_v32 = vpack.c.bf16 %v745_v31, %v744_v29  ;;  %v240_v33 = vpop.f32.mrb[11].mxu0  ;;  %757 = vmatpush3.bf16.msra.mxu1 %v303_v26 }
 0x109   :  { %v304_v34 = vpack.c.bf16 %v240_v33, %v237_v30 }
 0x10b   :  { %758 = vmatprep.subr.bf16.mxu1 %v304_v34 }
 0x10c   :  { %759 = vmatpush3.bf16.msra.mxu1 %v304_v34 }
 0x10d   :  { %v748_v35 = vpop.f32.mrb[12].mxu0  ;;  %760 = vmatprep.subr.bf16.mxu1 %v305_v32 }
 0x10e   :  { %v253_v36 = vpop.f32.mrb[13].mxu0 }
 0x10f   :  { %v749_v37 = vpop.f32.mrb[14].mxu0 }
 0x110   :  { %v307_v38 = vpack.c.bf16 %v749_v37, %v748_v35  ;;  %v256_v39 = vpop.f32.mrb[15].mxu0  ;;  %761 = vmatpush3.bf16.msra.mxu1 %v305_v32 }
 0x111   :  { %v306_v40 = vpack.c.bf16 %v256_v39, %v253_v36 }
 0x113   :  { %762 = vmatprep.subr.bf16.mxu1 %v306_v40 }
 0x114   :  { %763 = vmatpush3.bf16.msra.mxu1 %v306_v40 }
 0x115   :  { %764 = vmatprep.subr.bf16.mxu1 %v307_v38 }
 0x118   :  { %765 = vmatpush3.bf16.msra.mxu1 %v307_v38 }
 0x11b   :  { %767 = vmatmul.mubr.bf16.vlgmr.msra.gmra.mrb[0].mxu1 %v799_v41 }
 0x11c   :  { %770 = vmatprep.mubr.bf16.mxu1 %v800_v42 }
 0x123   :  { %771 = vmatmul.mubr.bf16.gmra.mrb[4].mxu1 %v801_v43 }
 0x124   :  { %774 = vmatprep.mubr.bf16.mxu1 %v802_v44 }
 0x12b   :  { %775 = vmatmul.mubr.bf16.gmra.mrb[8].mxu1 %v803_v45 }
 0x12c   :  { %778 = vmatprep.mubr.bf16.mxu1 %v804_v46 }
 0x133   :  { %779 = vmatmul.mubr.bf16.gmra.mrb[12].mxu1 %v805_v47 }
 0x1ee   :  { %v768_v49 = vpop.f32.mrb[0].mxu1 }
 0x1ef   :  { %v513_v50 = vadd.f32 %v768_v49, %v970_v48  ;;  %v390_v51 = vpop.f32.mrb[1].mxu1 }
 0x1f0   :  { %v511_v52 = vadd.f32 %v970_v48, %v390_v51  ;;  %v769_v53 = vpop.f32.mrb[2].mxu1 }
 0x1f1   :  { %v672_v54 = vmul.f32 -1.442695, %v513_v50  ;;  %v514_v55 = vadd.f32 %v769_v53, %v970_v48  ;;  %v393_v56 = vpop.f32.mrb[3].mxu1 }
 0x1f2   :  { %v670_v57 = vmul.f32 -1.442695, %v511_v52  ;;  %v512_v58 = vadd.f32 %v970_v48, %v393_v56 }
 0x1f3   :  { %806 = vpow2.f32 %v672_v54  ;;  %v673_v59 = vmul.f32 -1.442695, %v514_v55 }
 0x1f4   :  { %808 = vpow2.f32 %v670_v57  ;;  %v671_v60 = vmul.f32 -1.442695, %v512_v58 }
 0x1f5   :  { %810 = vpow2.f32 %v673_v59 }
 0x1f6   :  { %812 = vpow2.f32 %v671_v60  ;;  %v772_v61 = vpop.f32.mrb[4].mxu1 }
 0x1f7   :  { %v517_v62 = vadd.f32 %v772_v61, %v970_v48  ;;  %v406_v63 = vpop.f32.mrb[5].mxu1 }
 0x1f8   :  { %v515_v0 = vadd.f32 %v970_v48, %v406_v63  ;;  %v773_v1 = vpop.f32.mrb[6].mxu1 }
 0x1f9   :  { %v676_v2 = vmul.f32 -1.442695, %v517_v62  ;;  %v518_v3 = vadd.f32 %v773_v1, %v970_v48  ;;  %v409_v4 = vpop.f32.mrb[7].mxu1 }
 0x1fa   :  { %v674_v5 = vmul.f32 -1.442695, %v515_v0  ;;  %v516_v6 = vadd.f32 %v970_v48, %v409_v4 }
 0x1fb   :  { %814 = vpow2.f32 %v676_v2  ;;  %v677_v7 = vmul.f32 -1.442695, %v518_v3 }
 0x1fc   :  { %816 = vpow2.f32 %v674_v5  ;;  %v675_v8 = vmul.f32 -1.442695, %v516_v6 }
 0x1fd   :  { %v807_v9 = vpop.eup %806  ;;  %818 = vpow2.f32 %v677_v7 }
 0x1fe   :  { %v809_v10 = vpop.eup %808  ;;  %v577_v11 = vadd.f32 1.0, %v807_v9  ;;  %820 = vpow2.f32 %v675_v8  ;;  %v776_v12 = vpop.f32.mrb[8].mxu1 }
 0x1ff   :  { %v811_v13 = vpop.eup %810  ;;  %v575_v14 = vadd.f32 1.0, %v809_v10  ;;  %v521_v15 = vadd.f32 %v776_v12, %v970_v48  ;;  %v422_v16 = vpop.f32.mrb[9].mxu1 }
 0x200   :  { %v813_v17 = vpop.eup %812  ;;  %822 = vrcp.f32 %v577_v11  ;;  %v578_v18 = vadd.f32 1.0, %v811_v13  ;;  %v519_v19 = vadd.f32 %v970_v48, %v422_v16  ;;  %v777_v20 = vpop.f32.mrb[10].mxu1 }
 0x201   :  { %824 = vrcp.f32 %v575_v14  ;;  %v576_v21 = vadd.f32 1.0, %v813_v17  ;;  %v680_v22 = vmul.f32 -1.442695, %v521_v15  ;;  %v522_v23 = vadd.f32 %v777_v20, %v970_v48  ;;  %v425_v24 = vpop.f32.mrb[11].mxu1 }
 0x202   :  { %826 = vrcp.f32 %v578_v18  ;;  %v678_v25 = vmul.f32 -1.442695, %v519_v19  ;;  %v520_v26 = vadd.f32 %v970_v48, %v425_v24 }
 0x203   :  { %828 = vrcp.f32 %v576_v21  ;;  %v681_v27 = vmul.f32 -1.442695, %v522_v23 }
 0x204   :  { %830 = vpow2.f32 %v680_v22  ;;  %v679_v28 = vmul.f32 -1.442695, %v520_v26 }
 0x205   :  { %v815_v29 = vpop.eup %814  ;;  %832 = vpow2.f32 %v678_v25 }
 0x206   :  { %v817_v30 = vpop.eup %816  ;;  %v581_v31 = vadd.f32 1.0, %v815_v29  ;;  %834 = vpow2.f32 %v681_v27  ;;  %v780_v32 = vpop.f32.mrb[12].mxu1 }
 0x207   :  { %v819_v33 = vpop.eup %818  ;;  %v579_v34 = vadd.f32 1.0, %v817_v30  ;;  %836 = vpow2.f32 %v679_v28  ;;  %v525_v35 = vadd.f32 %v780_v32, %v970_v48  ;;  %v438_v36 = vpop.f32.mrb[13].mxu1 }
 0x208   :  { %v821_v37 = vpop.eup %820  ;;  %838 = vrcp.f32 %v581_v31  ;;  %v582_v38 = vadd.f32 1.0, %v819_v33  ;;  %v523_v39 = vadd.f32 %v970_v48, %v438_v36  ;;  %v781_v40 = vpop.f32.mrb[14].mxu1 }
 0x209   :  { %840 = vrcp.f32 %v579_v34  ;;  %v580_v41 = vadd.f32 1.0, %v821_v37  ;;  %v684_v42 = vmul.f32 -1.442695, %v525_v35  ;;  %v526_v43 = vadd.f32 %v781_v40, %v970_v48  ;;  %v441_v44 = vpop.f32.mrb[15].mxu1 }
 0x20a   :  { %v823_v45 = vpop.eup %822  ;;  %842 = vrcp.f32 %v582_v38  ;;  %v682_v46 = vmul.f32 -1.442695, %v523_v39  ;;  %v524_v47 = vadd.f32 %v970_v48, %v441_v44 }
 0x20b   :  { %v825_v49 = vpop.eup %824  ;;  %625 = vst [vmem:[%s1040_s4 + $0x10] sm:$0xff] %v823_v45  ;;  %844 = vrcp.f32 %v580_v41  ;;  %v685_v50 = vmul.f32 -1.442695, %v526_v43 }
 0x20c   :  { %v827_v51 = vpop.eup %826  ;;  %623 = vst [vmem:[%s1040_s4] sm:$0xff] %v825_v49  ;;  %846 = vpow2.f32 %v684_v42  ;;  %v683_v52 = vmul.f32 -1.442695, %v524_v47 }
 0x20d   :  { %v829_v53 = vpop.eup %828  ;;  %626 = vst [vmem:[%s1040_s4 + $0x18] sm:$0xff] %v827_v51  ;;  %848 = vpow2.f32 %v682_v46 }
 0x20e   :  { %v831_v48 = vpop.eup %830  ;;  %624 = vst [vmem:[%s1040_s4 + $0x8] sm:$0xff] %v829_v53  ;;  %850 = vpow2.f32 %v685_v50 }
 0x20f   :  { %v833_v54 = vpop.eup %832  ;;  %v585_v55 = vadd.f32 1.0, %v831_v48  ;;  %852 = vpow2.f32 %v683_v52 }
 0x210   :  { %v835_v56 = vpop.eup %834  ;;  %v583_v57 = vadd.f32 1.0, %v833_v54 }
 0x211   :  { %v837_v58 = vpop.eup %836  ;;  %854 = vrcp.f32 %v585_v55  ;;  %v586_v59 = vadd.f32 1.0, %v835_v56 }
 0x212   :  { %v839_v60 = vpop.eup %838  ;;  %856 = vrcp.f32 %v583_v57  ;;  %v584_v61 = vadd.f32 1.0, %v837_v58 }
 0x213   :  { %v841_v62 = vpop.eup %840  ;;  %629 = vst [vmem:[%s1040_s4 + $0x30] sm:$0xff] %v839_v60  ;;  %858 = vrcp.f32 %v586_v59 }
 0x214   :  { %v843_v63 = vpop.eup %842  ;;  %627 = vst [vmem:[%s1040_s4 + $0x20] sm:$0xff] %v841_v62  ;;  %860 = vrcp.f32 %v584_v61 }
 0x215   :  { %v845_v0 = vpop.eup %844  ;;  %630 = vst [vmem:[%s1040_s4 + $0x38] sm:$0xff] %v843_v63 }
 0x216   :  { %v847_v1 = vpop.eup %846  ;;  %628 = vst [vmem:[%s1040_s4 + $0x28] sm:$0xff] %v845_v0 }
 0x217   :  { %v849_v2 = vpop.eup %848  ;;  %v589_v3 = vadd.f32 1.0, %v847_v1 }
 0x218   :  { %v851_v4 = vpop.eup %850  ;;  %v587_v5 = vadd.f32 1.0, %v849_v2 }
 0x219   :  { %v853_v6 = vpop.eup %852  ;;  %862 = vrcp.f32 %v589_v3  ;;  %v590_v7 = vadd.f32 1.0, %v851_v4 }
 0x21a   :  { %864 = vrcp.f32 %v587_v5  ;;  %v588_v8 = vadd.f32 1.0, %v853_v6 }
 0x21b   :  { %v855_v9 = vpop.eup %854  ;;  %866 = vrcp.f32 %v590_v7 }
 0x21c   :  { %v857_v10 = vpop.eup %856  ;;  %633 = vst [vmem:[%s1040_s4 + $0x50] sm:$0xff] %v855_v9  ;;  %868 = vrcp.f32 %v588_v8 }
 0x21d   :  { %v859_v11 = vpop.eup %858  ;;  %631 = vst [vmem:[%s1040_s4 + $0x40] sm:$0xff] %v857_v10 }
 0x21e   :  { %v861_v12 = vpop.eup %860  ;;  %634 = vst [vmem:[%s1040_s4 + $0x58] sm:$0xff] %v859_v11 }
 0x21f   :  { %632 = vst [vmem:[%s1040_s4 + $0x48] sm:$0xff] %v861_v12 }
 0x223   :  { %v863_v13 = vpop.eup %862 }
 0x224   :  { %v865_v14 = vpop.eup %864  ;;  %637 = vst [vmem:[%s1040_s4 + $0x70] sm:$0xff] %v863_v13 }
 0x225   :  { %v867_v15 = vpop.eup %866  ;;  %635 = vst [vmem:[%s1040_s4 + $0x60] sm:$0xff] %v865_v14 }
 0x226   :  { %v869_v16 = vpop.eup %868  ;;  %638 = vst [vmem:[%s1040_s4 + $0x78] sm:$0xff] %v867_v15 }
 0x227   :  { %636 = vst [vmem:[%s1040_s4 + $0x68] sm:$0xff] %v869_v16 }

</bundles_post_ra>
